<compile_context>
chip_gen: v6e
topology: v6e:2x2x1
jax: 0.10.0
libtpu: 0.0.40
codegen_flags: <defaults>
</compile_context>

<pallas_src>
import jax
import jax.numpy as jnp
from jax.experimental import pallas as pl
from jax.experimental.pallas import tpu as pltpu


def _round_up(x, m):
    return ((x + m - 1) // m) * m


def _pick_tile(n, d_pad, in_bytes, out_bytes, budget_bytes):
    """Largest MXU-friendly tile that fits the VMEM budget and (if possible)
    gives a grid with >= 2 steps per axis (pipelining / v7x megacore split)."""
    cap = _round_up(n, 128)  # never tile wider than the problem needs
    feasible = []
    for c in (1024, 512, 256, 128):
        if c > cap:
            continue
        footprint = 4 * c * d_pad * in_bytes + 2 * c * c * out_bytes
        if footprint <= budget_bytes:
            feasible.append(c)
    if not feasible:
        return 128
    multi = [c for c in feasible if pl.cdiv(n, c) >= 2]
    return max(multi) if multi else max(feasible)


def _inner_product_decoder_kernel(zr_ref, zc_ref, out_ref):
    # zr_ref : (t, Dpad)   row block of z (lhs)
    # zc_ref : (Dpad, t)   column block of z^T (rhs, lane-dense, no .T needed)
    # out_ref: (t, t)      adjacency block, sigmoid applied in place
    logits = jnp.dot(zr_ref[...], zc_ref[...],
                     preferred_element_type=jnp.float32)
    # Exact sigmoid with a single EUP transcendental:
    #   sigmoid(x) = 0.5 * tanh(0.5 * x) + 0.5   (muls/adds ride the 4 VALU slots)
    out_ref[...] = (0.5 * jnp.tanh(0.5 * logits) + 0.5).astype(out_ref.dtype)


def inner_product_decoder(z, *, dropout=0.0, max_tile=1024, out_dtype=None):
    """adj = sigmoid(z @ z.T) as a tiled Pallas TPU kernel.

    z: [N, D] float array (arbitrary N, D).
    dropout must be 0.0 (module default / eval mode).
    out_dtype: recommended jnp.bfloat16 for performance (halves output
      writeback bytes on this writeback-bound kernel); default z.dtype for
      exact parity with the reference module.
    """
    assert dropout == 0.0, "only dropout=0.0 (eval / module default) is supported"

    N, D = z.shape
    out_dtype = jnp.dtype(z.dtype if out_dtype is None else out_dtype)

    # Pad the contraction dim once to a lane-aligned width (zeros don't change
    # any valid inner product). N is NOT padded: edge output blocks are masked.
    d_pad = _round_up(D, 128)
    z_pad = jnp.pad(z, ((0, 0), (0, d_pad - D))) if d_pad != D else z
    zt_pad = z_pad.T  # (d_pad, N): lane-dense rhs built once in the wrapper

    in_bytes = z_pad.dtype.itemsize
    out_bytes = out_dtype.itemsize

    vmem_budget = 40 * 1024 * 1024
    t = min(_pick_tile(N, d_pad, in_bytes, out_bytes, vmem_budget), max_tile)
    t = max(t, 128)

    n_blocks = pl.cdiv(N, t)
    grid = (n_blocks, n_blocks)  # j innermost -> row block of z reused across stripe

    cost = pl.CostEstimate(
        flops=2 * N * N * d_pad,
        transcendentals=N * N,
        bytes_accessed=(out_bytes * N * N                 # output writeback
                        + in_bytes * N * d_pad            # lhs row blocks (read once)
                        + in_bytes * N * d_pad * n_blocks),  # rhs refetched per row stripe
    )

    adj = pl.pallas_call(
        _inner_product_decoder_kernel,
        out_shape=jax.ShapeDtypeStruct((N, N), out_dtype),
        grid_spec=pltpu.PrefetchScalarGridSpec(
            num_scalar_prefetch=0,
            grid=grid,
            in_specs=[
                pl.BlockSpec((t, d_pad), lambda i, j: (i, 0)),   # rows of z
                pl.BlockSpec((d_pad, t), lambda i, j: (0, j)),   # cols of z^T
            ],
            out_specs=pl.BlockSpec((t, t), lambda i, j: (i, j)),
        ),
        compiler_params=pltpu.CompilerParams(
            dimension_semantics=("parallel", "parallel"),
            vmem_limit_bytes=48 * 1024 * 1024,
        ),
        cost_estimate=cost,
    )(z_pad, zt_pad)

    return adj


if __name__ == "__main__":
    key = jax.random.PRNGKey(0)
    N, D = 256, 32  # small latent embedding: 256 nodes, 32-dim latent
    z = jax.random.normal(key, (N, D), dtype=jnp.float32)

    ref = jax.nn.sigmoid(z @ z.T)

    # Exact-dtype path (matches module semantics; tanh-form sigmoid is exact).
    adj = jax.block_until_ready(inner_product_decoder(z))
    assert adj.shape == (N, N)
    assert adj.dtype == z.dtype
    assert jnp.allclose(adj, ref, atol=1e-5, rtol=1e-5)

    # Recommended perf setting: bf16 output (halves HBM writeback bytes).
    adj_bf16 = jax.block_until_ready(
        inner_product_decoder(z, out_dtype=jnp.bfloat16))
    assert adj_bf16.shape == (N, N)
    assert adj_bf16.dtype == jnp.bfloat16
    assert jnp.allclose(adj_bf16.astype(jnp.float32), ref, atol=1e-2, rtol=1e-2)

    print("KERNEL_OK")
</pallas_src>

<mosaic_0001>
module attributes {stable_mosaic.version = 11 : i64} {
  func.func @_inner_product_decoder_kernel(%arg0: i32, %arg1: i32, %arg2: memref<128x128xf32, #tpu.memory_space<vmem>>, %arg3: memref<128x128xf32, #tpu.memory_space<vmem>>, %arg4: memref<128x128xf32, #tpu.memory_space<vmem>>) attributes {dimension_semantics = [#tpu.dimension_semantics<parallel>, #tpu.dimension_semantics<parallel>], iteration_bounds = array<i64: 2, 2>, scalar_prefetch = 0 : i64, scratch_operands = 0 : i64, tpu.core_type = #tpu.core_type<tc>, window_params = [{transform_indices = @transform_0, window_bounds = array<i64: 128, 128>}, {transform_indices = @transform_1, window_bounds = array<i64: 128, 128>}, {transform_indices = @transform_2, window_bounds = array<i64: 128, 128>}]} {
    %c0 = arith.constant 0 : index
    %c0_0 = arith.constant 0 : index
    %0 = vector.load %arg2[%c0, %c0_0] : memref<128x128xf32, #tpu.memory_space<vmem>>, vector<128x128xf32>
    %c0_1 = arith.constant 0 : index
    %c0_2 = arith.constant 0 : index
    %1 = vector.load %arg3[%c0_1, %c0_2] : memref<128x128xf32, #tpu.memory_space<vmem>>, vector<128x128xf32>
    %cst = arith.constant dense<0.000000e+00> : vector<128x128xf32>
    %2 = tpu.matmul %0, %1, %cst {dimension_numbers = #tpu.dot_dimension_numbers<[1], [0], [0], [1], [0, 0, 1, 1], [], []>} : vector<128x128xf32>, vector<128x128xf32>, vector<128x128xf32> -> vector<128x128xf32>
    %cst_3 = arith.constant 5.000000e-01 : f32
    %3 = vector.broadcast %cst_3 : f32 to vector<128x128xf32>
    %4 = arith.mulf %3, %2 : vector<128x128xf32>
    %5 = math.tanh %4 : vector<128x128xf32>
    %cst_4 = arith.constant 5.000000e-01 : f32
    %6 = vector.broadcast %cst_4 : f32 to vector<128x128xf32>
    %7 = arith.mulf %6, %5 : vector<128x128xf32>
    %cst_5 = arith.constant 5.000000e-01 : f32
    %8 = vector.broadcast %cst_5 : f32 to vector<128x128xf32>
    %9 = arith.addf %7, %8 : vector<128x128xf32>
    %c0_6 = arith.constant 0 : index
    %c0_7 = arith.constant 0 : index
    %10 = vector.load %arg4[%c0_6, %c0_7] : memref<128x128xf32, #tpu.memory_space<vmem>>, vector<128x128xf32>
    tpu.vector_store %arg4[%c0_6, %c0_7], %9 {strides = array<i32>} : memref<128x128xf32, #tpu.memory_space<vmem>>, vector<128x128xf32>,
    return
  }
  func.func @transform_0(%arg0: i32, %arg1: i32) -> (i32, i32) {
    %c0_i32 = arith.constant 0 : i32
    %c0_i32_0 = arith.constant 0 : i32
    return %arg0, %c0_i32 : i32, i32
  }
  func.func @transform_1(%arg0: i32, %arg1: i32) -> (i32, i32) {
    %c0_i32 = arith.constant 0 : i32
    %c0_i32_0 = arith.constant 0 : i32
    return %c0_i32, %arg1 : i32, i32
  }
  func.func @transform_2(%arg0: i32, %arg1: i32) -> (i32, i32) {
    %c0_i32 = arith.constant 0 : i32
    return %arg0, %arg1 : i32, i32
  }
}

</mosaic_0001>

<bundles_post_ra>
// kernel: tpu_custom_call.1
= control target key start
LH: loop header
LB: loop body
LE: loop exit
PB: predicated region body
PF: predicated region fallthrough
CT: control target
= control target key end

     0   :  { %s1486_s0 = inlined_call_operand.hbm [shape: f32[256,128], index: 0, kind: input, shape index: {}]   ;;  %s1487_s1 = inlined_call_operand.hbm [shape: f32[128,256], index: 1, kind: input, shape index: {}]   ;;  %s1488_s2 = inlined_call_operand.hbm [shape: f32[256,256], index: 2, kind: output, shape index: {}]  }
   0x1   :  { %1498 = sst [smem:[#allocation17_spill]] %s1486_s0 }
   0x2   :  { %1499 = sst [smem:[#allocation18_spill]] %s1488_s2 }
   0x3   :  { %7 = vsyncpa [#allocation3], 0 }
   0x4   :  { %9 = vsyncpa [#allocation3 + $0x1], 0 }
   0x5   :  { %10 = vsyncpa [#allocation6], 0 }
   0x6   :  { %12 = vsyncpa [#allocation6 + $0x1], 0 }
   0x7   :  { %13 = vsyncpa [#allocation4], 0 }
   0x8   :  { %15 = vsyncpa [#allocation4 + $0x1], 0  ;;  %s1139_s9 = smov 0   ;;  %s1141_s10 = smov 0  }
   0x9   :  { %s1143_s11 = smov 0   ;;  %s1145_s12 = smov 0  }
   0xa   :  { %s1147_s13 = smov 0   ;;  %s1149_s14 = smov 0  }
   0xb   :  { %s1151_s15 = smov 0   ;;  %s1153_s16 = smov 0  }
   0xc   :  { %s1155_s17 = smov 0   ;;  %s1157_s18 = smov 0  }
   0xd   :  { %s1159_s19 = smov 0   ;;  %s1161_s20 = smov 0  }
   0xe   :  { %s1163_s21 = smov 0   ;;  %s1165_s22 = smov 0  }
   0xf LB: > { %1500 = sst [smem:[#allocation11_spill]] %s1097_s18  ;;  %s599_s23 = sadd.s32 4294967295, %s1113_s22   ;;  %s1113_s22 = sphi %s1165_s22, %s21_s22   ;;  %s1109_s21 = sphi %s1163_s21, %s1530_s21   ;;  %s1105_s20 = sphi %s1161_s20, %s1542_s20   ;;  %s1101_s19 = sphi %s1159_s19, %s1528_s19   ;;  %s1097_s18 = sphi %s1157_s18, %s1541_s18   ;;  %s1093_s17 = sphi %s1155_s17, %s1540_s17   ;;  %s1089_s16 = sphi %s1153_s16, %s1539_s16   ;;  %s1085_s15 = sphi %s1151_s15, %s1538_s15   ;;  %s1081_s14 = sphi %s1149_s14, %s1537_s14   ;;  %s1077_s13 = sphi %s1147_s13, %s1536_s13   ;;  %s1073_s12 = sphi %s1145_s12, %s1535_s12   ;;  %s1069_s11 = sphi %s1143_s11, %s1534_s11   ;;  %s1065_s10 = sphi %s1141_s10, %s1533_s10   ;;  %s1061_s9 = sphi %s1139_s9, %s1532_s9  }
  0x10   : > { %1501 = sst [smem:[#allocation12_spill]] %s1109_s21  ;;  %p47_p0 = scmp.ne.s32.totalorder %s1093_s17, %s1089_s16 }
  0x11   : > { %p48_p1 = scmp.eq.s32.totalorder %s1113_s22, 0  ;;  %p53_p2 = scmp.ne.s32.totalorder %s1089_s16, %s1085_s15 }
  0x12   : > { %p1214_p3 = scmp.eq.s32.totalorder %s599_s23, 0  ;;  %p1218_p4 = scmp.eq.s32.totalorder %s599_s23, 3 }
  0x13   : > { %p49_p5 = por %p48_p1, %p47_p0  ;;  %p757_p7 = scmp.lt.s32.totalorder %s1113_s22, 4 }
  0x14   : > { %p1226_p6 = por %p1214_p3, %p53_p2  ;;  %s131_s29 = sand.u32 1, %s1093_s17  }
  0x15   : > { %s618_s30 = sshll.u32 %s1109_s21, 11  ;;  %s603_s3 = sshll.u32 %s131_s29, 7 }
  0x16   : > { %s1505_s0 = sld [smem:[#allocation17_spill]]  ;;  %s135_s7 = scalar_lea.vmem [#allocation2], %s603_s3 }
  0x17   : > { %s142_s8 = sshll.u32 %s135_s7, 4  ;;  %p1238_p8 = pnand %p757_p7, %p49_p5  ;;  %s143_s8 = int_to_ptr.vmem [resolvable:$true] %s142_s8 }
  0x18   : > { %s132_s23 = scalar_lea.sflag [#allocation3], %s131_s29  ;;  %s922_s25 = scalar_lea.vmem %s143_s8, 2048 }
  0x19   : > { %p911_p9 = pneg %p1238_p8  ;;  %p923_p10 = scmp.ne.s32.totalorder %s143_s8, %s922_s25 }
  0x1a   : > { %s1115_s24 = smov [#allocation2]  }
  0x1b   : > { %p925_p11 = pnand %p923_p10, %p911_p9  ;;  %s927_s2 = sshll.u32 %s1115_s24, 4  ;;  %s928_s2 = int_to_ptr.vmem [resolvable:$false] %s927_s2 }
  0x1c   : > { %s141_s6 = scalar_lea.hbm %s1505_s0, %s618_s30  ;;  %s929_s30 = scalar_lea.vmem %s928_s2, 4096 }
  0x1d   : > { %p926_p12 = pneg %p925_p11  ;;  %p930_p13 = scmp.lt.s32.totalorder %s143_s8, %s928_s2 }
  0x1e   : > { %p931_p0 = scmp.lt.s32.totalorder %s929_s30, %s922_s25 }
  0x20   : > { %p932_p2 = por %p931_p0, %p930_p13 }
  0x22   : > { %p933_p5 = pnand %p932_p2, %p926_p12 }
  0x24   : > { %936 = shalt.err (!%p933_p5)
}
  0x25   : > { %s1490_s3 = smov 128   ;;  %s1491_s2 = smov 8  }
  0x26   : > { %749 = dma.hbm_to_vmem [thread:$0]  (!%p1238_p8), %s141_s6, 2048, %s143_s8, %s132_s23, %s1490_s3, %s1490_s3, %s1491_s2  }
  0x27   : > { %p608_p9 = scmp.ge.s32.totalorder %s1113_s22, 1  ;;  %p170_p10 = scmp.lt.s32.totalorder %s1113_s22, 5 }
  0x28   : > { %s600_s25 = sadd.s32 4294967294, %s1113_s22   ;;  %s30_s29 = sadd.s32 1, %s1105_s20 }
  0x29   : > { %p1251_p11 = pnand %p608_p9, %p170_p10  ;;  %s66_s4 = sadd.s32 1, %s1081_s14 }
  0x2a   : > { %p31_p12 = scmp.ge.s32.totalorder %s30_s29, 2  ;;  %p73_p13 = scmp.ne.s32.totalorder %s1081_s14, %s1077_s13 }
  0x2b   : > { %p79_p0 = scmp.ne.s32.totalorder %s1077_s13, %s1073_s12  ;;  %s94_s5 = sadd.s32 1, %s1069_s11 }
  0x2c   : > { %s1544_s29 = smov (%p31_p12, %s30_s29), 0  ;;  %s1509_s6 = sadd.s32 1, %s1109_s21 }
  0x2d   : > { %1508 = sst [smem:[#allocation13_spill]] %s1544_s29  ;;  %s1546_s6 = smov (!%p31_p12, %s1509_s6), %s1109_s21 }
  0x2e   : > { %s63_s7 = ssub.s32 %s1105_s20, %s1544_s29  ;;  %p1272_p8 = por %p73_p13, %p48_p1 }
  0x2f   : > { %p35_p2 = scmp.ge.s32.totalorder %s1546_s6, 2  ;;  %p64_p5 = scmp.eq.s32.totalorder %s63_s7, 0 }
  0x30   : > { %p1278_p9 = por %p79_p0, %p1214_p3  ;;  %p104_p10 = scmp.ne.s32.totalorder %s1069_s11, %s1065_s10 }
  0x31   : > { %s1548_s6 = smov (%p35_p2, %s1546_s6), 0  ;;  %p110_p13 = scmp.ne.s32.totalorder %s1065_s10, %s1061_s9 }
  0x32   : > { %1512 = sst [smem:[#allocation14_spill]] %s1548_s6  ;;  %s37_s23 = ssub.s32 %s1109_s21, %s1548_s6 }
  0x33   : > { %s1287_s15 = scalar_select %p64_p5, %s1081_s14, %s66_s4  }
  0x34   : > { %p1293_p1 = por %p1218_p4, %p104_p10  ;;  %p38_p12 = scmp.eq.s32.totalorder %s37_s23, 0 }
  0x35   : > { %1513 = sst [smem:[#allocation15_spill]] %s1287_s15  ;;  %s91_s26 = sor.u32 %s63_s7, %s37_s23 }
  0x36   : > { %s1514_s30 = scalar_select %p1293_p1, 1, 0 }
  0x37   : > { %p92_p3 = scmp.eq.s32.totalorder %s91_s26, 0  ;;  %s1516_s3 = sadd.s32 1, %s1093_s17 }
  0x38   : > { %1515 = sst [smem:[#allocation16_spill]] %s1514_s30  ;;  %p111_p0 = scmp.eq.s32.totalorder %s600_s25, 3 }
  0x39   : > { %s1302_s2 = scalar_select %p38_p12, %s1093_s17, %s1516_s3  }
  0x3a   : > { %s1305_s0 = scalar_select %p92_p3, %s1069_s11, %s94_s5  }
  0x3b   : > { %s152_s4 = sand.u32 1, %s1081_s14   ;;  %p1308_p2 = por %p111_p0, %p110_p13 }
  0x3c   : > { %s606_s29 = sshll.u32 %s152_s4, 7  ;;  %s607_s6 = sshll.u32 %s1105_s20, 7 }
  0x3d   : > { %s1517_s27 = scalar_select %p1308_p2, 1, 0 }
  0x3e   : > { %s156_s21 = scalar_lea.vmem [#allocation5], %s606_s29  ;;  %s161_s7 = scalar_lea.hbm %s1487_s1, %s607_s6 }
  0x3f   : > { %s162_s15 = sshll.u32 %s156_s21, 4  ;;  %p1320_p4 = pnand %p757_p7, %p1272_p8  ;;  %s163_s15 = int_to_ptr.vmem [resolvable:$true] %s162_s15 }
  0x40   : > { %s153_s25 = scalar_lea.sflag [#allocation6], %s152_s4  ;;  %s950_s5 = scalar_lea.vmem %s163_s15, 2048 }
  0x41   : > { %p939_p5 = pneg %p1320_p4  ;;  %p951_p10 = scmp.ne.s32.totalorder %s163_s15, %s950_s5 }
  0x42   : > { %s1118_s21 = smov [#allocation5]  }
  0x43   : > { %p953_p12 = pnand %p951_p10, %p939_p5  ;;  %s955_s29 = sshll.u32 %s1118_s21, 4  ;;  %s956_s29 = int_to_ptr.vmem [resolvable:$false] %s955_s29 }
  0x44   : > { %s957_s18 = scalar_lea.vmem %s956_s29, 4096  ;;  %p958_p13 = scmp.lt.s32.totalorder %s163_s15, %s956_s29 }
  0x45   : > { %p954_p3 = pneg %p953_p12  ;;  %p959_p0 = scmp.lt.s32.totalorder %s957_s18, %s950_s5 }
  0x47   : > { %p960_p2 = por %p959_p0, %p958_p13 }
  0x49   : > { %p961_p1 = pnand %p960_p2, %p954_p3 }
  0x4b   : > { %964 = shalt.err (!%p961_p1)
}
  0x4c   : > { %s1119_s6 = smov 256   ;;  %s1519_s8 = smov 8  }
  0x4d   : > { %s1520_s23 = smov 128   ;;  %174 = sbr.rel (%p1251_p11) target bundleno = 364 (0x16c), region = 28 }
  0x4e   : > { %752 = dma.hbm_to_vmem [thread:$0]  (!%p1320_p4), %s161_s7, 2048, %s163_s15, %s153_s25, %s1119_s6, %s1520_s23, %s1519_s8  }
  0x4f   : > { %s176_s30 = sand.u32 (!%p1251_p11), 1, %s1089_s16  }
  0x50   : > { %s609_s26 = sshll.u32 (!%p1251_p11), %s176_s30, 7  ;;  %s177_s4 = scalar_lea.sflag (!%p1251_p11), [#allocation3], %s176_s30 }
  0x51   : > { %s1333_s21 = scalar_lea.vmem (!%p1251_p11), [#allocation2], %s609_s26 }
  0x52   : > { %1048 = dma.done.wait (%p1226_p6), %s177_s4, 2048  }
  0x53   : > { %1050 = vsyncadd (%p1226_p6), %s177_s4, 4294965248  ;;  %s185_s3 = sand.u32 1, %s1077_s13  }
  0x54   : > { %s610_s5 = sshll.u32 %s185_s3, 7  ;;  %s186_s15 = scalar_lea.sflag [#allocation6], %s185_s3 }
  0x55   : > { %s1340_s7 = scalar_lea.vmem [#allocation5], %s610_s5 }
  0x56   : > { %1052 = dma.done.wait (%p1278_p9), %s186_s15, 2048  }
  0x57   : > { %1054 = vsyncadd (%p1278_p9), %s186_s15, 4294965248  ;;  %v248_v0 = vld [vmem:[%s1340_s7 + $0x78] sm:$0xff]  ;;  %v247_v1 = vld [vmem:[%s1340_s7 + $0x70] sm:$0xff]  ;;  %s212_s28 = sand.u32 1, %s1065_s10   ;;  %s1521_s25 = sld [smem:[#allocation11_spill]] }
  0x58   : > { %652 = vmatprep.subr.mxu0 %v248_v0  ;;  %708 = vmatprep.subr.mxu1 %v248_v0  ;;  %v246_v2 = vld [vmem:[%s1340_s7 + $0x68] sm:$0xff]  ;;  %v245_v3 = vld [vmem:[%s1340_s7 + $0x60] sm:$0xff]  ;;  %v244_v4 = vld [vmem:[%s1340_s7 + $0x58] sm:$0xff]  ;;  %s611_s24 = sshll.u32 %s212_s28, 7  ;;  %s619_s29 = sshll.u32 %s1101_s19, 5 }
  0x59   : > { %653 = vmatpush3.msra.mxu0 %v248_v0  ;;  %724 = vmatpush3.msra.mxu1 %v248_v0  ;;  %v243_v5 = vld [vmem:[%s1340_s7 + $0x50] sm:$0xff]  ;;  %v242_v6 = vld [vmem:[%s1340_s7 + $0x48] sm:$0xff]  ;;  %v241_v7 = vld [vmem:[%s1340_s7 + $0x40] sm:$0xff]  ;;  %s1381_s12 = scalar_lea.vmem [#allocation7], %s611_s24  ;;  %s1522_s8 = sld [smem:[#allocation16_spill]] }
  0x5a   : > { %654 = vmatprep.subr.mxu0 %v247_v1  ;;  %709 = vmatprep.subr.mxu1 %v247_v1  ;;  %v240_v8 = vld [vmem:[%s1340_s7 + $0x38] sm:$0xff]  ;;  %v239_v9 = vld [vmem:[%s1340_s7 + $0x30] sm:$0xff]  ;;  %v238_v10 = vld [vmem:[%s1340_s7 + $0x28] sm:$0xff]  ;;  %s490_s6 = sshll.u32 %s1381_s12, 4  ;;  %s1523_s26 = sld [smem:[#allocation18_spill]]  ;;  %s1404_s6 = int_to_ptr.vmem [resolvable:$true] %s490_s6 }
  0x5b   : > { %655 = vmatpush3.msra.mxu0 %v247_v1  ;;  %725 = vmatpush3.msra.mxu1 %v247_v1  ;;  %v237_v11 = vld [vmem:[%s1340_s7 + $0x20] sm:$0xff]  ;;  %v236_v12 = vld [vmem:[%s1340_s7 + $0x18] sm:$0xff]  ;;  %v235_v13 = vld [vmem:[%s1340_s7 + $0x10] sm:$0xff]  ;;  %s965_s3 = scalar_lea.vmem %s1404_s6, 2048  ;;  %s1120_s5 = smov [#allocation7]  }
  0x5c   : > { %656 = vmatprep.subr.mxu0 %v246_v2  ;;  %710 = vmatprep.subr.mxu1 %v246_v2  ;;  %v234_v14 = vld [vmem:[%s1340_s7 + $0x8] sm:$0xff]  ;;  %v233_v15 = vld [vmem:[%s1340_s7] sm:$0xff]  ;;  %v219_v20 = vld [vmem:[%s1333_s21 + $0x10] sm:$0xff]  ;;  %p966_p6 = scmp.ne.s32.totalorder %s1404_s6, %s965_s3  ;;  %s969_s15 = sshll.u32 %s1120_s5, 4  ;;  %s970_s15 = int_to_ptr.vmem [resolvable:$false] %s969_s15 }
  0x5d   : > { %657 = vmatpush3.msra.mxu0 %v246_v2  ;;  %726 = vmatpush3.msra.mxu1 %v246_v2  ;;  %v217_v16 = vld [vmem:[%s1333_s21] sm:$0xff]  ;;  %v218_v18 = vld [vmem:[%s1333_s21 + $0x8] sm:$0xff]  ;;  %v227_v21 = vld [vmem:[%s1333_s21 + $0x50] sm:$0xff]  ;;  %s487_s18 = sadd.s32 %s1521_s25, %s619_s29  ;;  %s971_s7 = scalar_lea.vmem %s970_s15, 4096 }
  0x5e   : > { %658 = vmatprep.subr.mxu0 %v245_v3  ;;  %711 = vmatprep.subr.mxu1 %v245_v3  ;;  %v225_v17 = vld [vmem:[%s1333_s21 + $0x40] sm:$0xff]  ;;  %v226_v19 = vld [vmem:[%s1333_s21 + $0x48] sm:$0xff]  ;;  %v220_v22 = vld [vmem:[%s1333_s21 + $0x18] sm:$0xff]  ;;  %s615_s19 = sshll.u32 %s487_s18, 7  ;;  %p972_p9 = scmp.lt.s32.totalorder %s1404_s6, %s970_s15 }
  0x5f   : > { %659 = vmatpush3.msra.mxu0 %v245_v3  ;;  %727 = vmatpush3.msra.mxu1 %v245_v3  ;;  %v228_v23 = vld [vmem:[%s1333_s21 + $0x58] sm:$0xff]  ;;  %v221_v24 = vld [vmem:[%s1333_s21 + $0x20] sm:$0xff]  ;;  %v222_v26 = vld [vmem:[%s1333_s21 + $0x28] sm:$0xff]  ;;  %p1524_p7 = scmp.ne.s32.totalorder %s1522_s8, 0  ;;  %p973_p1 = scmp.lt.s32.totalorder %s971_s7, %s965_s3 }
  0x60   : > { %660 = vmatprep.subr.mxu0 %v244_v4  ;;  %712 = vmatprep.subr.mxu1 %v244_v4  ;;  %v229_v25 = vld [vmem:[%s1333_s21 + $0x60] sm:$0xff]  ;;  %v230_v27 = vld [vmem:[%s1333_s21 + $0x68] sm:$0xff]  ;;  %v223_v28 = vld [vmem:[%s1333_s21 + $0x30] sm:$0xff]  ;;  %s1401_s4 = scalar_lea.hbm %s1523_s26, %s615_s19 }
  0x61   : > { %661 = vmatpush3.msra.mxu0 %v244_v4  ;;  %728 = vmatpush3.msra.mxu1 %v244_v4  ;;  %v231_v29 = vld [vmem:[%s1333_s21 + $0x70] sm:$0xff]  ;;  %v224_v30 = vld [vmem:[%s1333_s21 + $0x38] sm:$0xff]  ;;  %p967_p11 = pnand %p966_p6, %p1524_p7  ;;  %p974_p2 = por %p973_p1, %p972_p9 }
  0x62   : > { %662 = vmatprep.subr.mxu0 %v243_v5  ;;  %713 = vmatprep.subr.mxu1 %v243_v5  ;;  %v232_v31 = vld [vmem:[%s1333_s21 + $0x78] sm:$0xff]  ;;  %s1411_s21 = scalar_lea.sflag [#allocation4], %s212_s28 }
  0x63   : > { %663 = vmatpush3.msra.mxu0 %v243_v5  ;;  %729 = vmatpush3.msra.mxu1 %v243_v5  ;;  %p968_p8 = pneg %p967_p11 }
  0x64   : > { %664 = vmatprep.subr.mxu0 %v242_v6  ;;  %714 = vmatprep.subr.mxu1 %v242_v6 }
  0x65   : > { %665 = vmatpush3.msra.mxu0 %v242_v6  ;;  %730 = vmatpush3.msra.mxu1 %v242_v6  ;;  %p975_p4 = pnand %p974_p2, %p968_p8 }
  0x66   : > { %666 = vmatprep.subr.mxu0 %v241_v7  ;;  %715 = vmatprep.subr.mxu1 %v241_v7 }
  0x67   : > { %667 = vmatpush3.msra.mxu0 %v241_v7  ;;  %731 = vmatpush3.msra.mxu1 %v241_v7 }
  0x68   : > { %668 = vmatprep.subr.mxu0 %v240_v8  ;;  %716 = vmatprep.subr.mxu1 %v240_v8 }
  0x69   : > { %669 = vmatpush3.msra.mxu0 %v240_v8  ;;  %732 = vmatpush3.msra.mxu1 %v240_v8 }
  0x6a   : > { %670 = vmatprep.subr.mxu0 %v239_v9  ;;  %717 = vmatprep.subr.mxu1 %v239_v9 }
  0x6b   : > { %671 = vmatpush3.msra.mxu0 %v239_v9  ;;  %733 = vmatpush3.msra.mxu1 %v239_v9 }
  0x6c   : > { %672 = vmatprep.subr.mxu0 %v238_v10  ;;  %718 = vmatprep.subr.mxu1 %v238_v10 }
  0x6d   : > { %673 = vmatpush3.msra.mxu0 %v238_v10  ;;  %734 = vmatpush3.msra.mxu1 %v238_v10 }
  0x6e   : > { %674 = vmatprep.subr.mxu0 %v237_v11  ;;  %719 = vmatprep.subr.mxu1 %v237_v11 }
  0x6f   : > { %675 = vmatpush3.msra.mxu0 %v237_v11  ;;  %735 = vmatpush3.msra.mxu1 %v237_v11 }
  0x70   : > { %676 = vmatprep.subr.mxu0 %v236_v12  ;;  %720 = vmatprep.subr.mxu1 %v236_v12 }
  0x71   : > { %677 = vmatpush3.msra.mxu0 %v236_v12  ;;  %736 = vmatpush3.msra.mxu1 %v236_v12 }
  0x72   : > { %678 = vmatprep.subr.mxu0 %v235_v13  ;;  %721 = vmatprep.subr.mxu1 %v235_v13 }
  0x73   : > { %679 = vmatpush3.msra.mxu0 %v235_v13  ;;  %737 = vmatpush3.msra.mxu1 %v235_v13 }
  0x74   : > { %680 = vmatprep.subr.mxu0 %v234_v14  ;;  %722 = vmatprep.subr.mxu1 %v234_v14 }
  0x75   : > { %681 = vmatpush3.msra.mxu0 %v234_v14  ;;  %738 = vmatpush3.msra.mxu1 %v234_v14 }
  0x76   : > { %682 = vmatprep.subr.mxu0 %v233_v15  ;;  %723 = vmatprep.subr.mxu1 %v233_v15 }
  0x77   : > { %683 = vmatpush3.msra.mxu0 %v233_v15  ;;  %739 = vmatpush3.msra.mxu1 %v233_v15 }
  0x78   : > { %684 = vmatprep.mubr.f32.mxu0 %v217_v16  ;;  %696 = vmatprep.mubr.f32.mxu1 %v225_v17 }
  0x79   : > { %685 = vmatmul.mubr.f32.vlgmr.msra.gmra.mxu0 %v218_v18  ;;  %697 = vmatmul.mubr.f32.vlgmr.msra.gmra.mxu1 %v226_v19 }
  0x7a   : > { %687 = vmatprep.mubr.f32.mxu0 %v219_v20  ;;  %699 = vmatprep.mubr.f32.mxu1 %v227_v21 }
  0x7d   : > { %688 = vmatmul.mubr.f32.gmra.mxu0 %v220_v22  ;;  %700 = vmatmul.mubr.f32.gmra.mxu1 %v228_v23 }
  0x7e   : > { %690 = vmatprep.mubr.f32.mxu0 %v221_v24  ;;  %702 = vmatprep.mubr.f32.mxu1 %v229_v25 }
  0x81   : > { %691 = vmatmul.mubr.f32.gmra.mxu0 %v222_v26  ;;  %703 = vmatmul.mubr.f32.gmra.mxu1 %v230_v27 }
  0x82   : > { %693 = vmatprep.mubr.f32.mxu0 %v223_v28  ;;  %705 = vmatprep.mubr.f32.mxu1 %v231_v29 }
  0x85   : > { %694 = vmatmul.mubr.f32.gmra.mxu0 %v224_v30  ;;  %706 = vmatmul.mubr.f32.gmra.mxu1 %v232_v31 }
 0x139   : > { %v686_v32 = vpop.f32.mrf.mxu0  ;;  %v698_v33 = vpop.f32.mrf.mxu1 }
 0x13a   : > { %v395_v34 = vmul.f32 0.5, %v686_v32  ;;  %v403_v35 = vmul.f32 0.5, %v698_v33 }
 0x13b   : > { %v315_v36 = vpop.f32.mrf.mxu0  ;;  %v355_v37 = vpop.f32.mrf.mxu1 }
 0x13c   : > { %877 = vtanh.f32 %v395_v34  ;;  %v394_v38 = vmul.f32 0.5, %v315_v36  ;;  %v402_v39 = vmul.f32 0.5, %v355_v37 }
 0x13d   : > { %879 = vtanh.f32 %v403_v35  ;;  %v689_v40 = vpop.f32.mrf.mxu0  ;;  %v701_v41 = vpop.f32.mrf.mxu1 }
 0x13e   : > { %881 = vtanh.f32 %v394_v38  ;;  %v397_v42 = vmul.f32 0.5, %v689_v40  ;;  %v405_v43 = vmul.f32 0.5, %v701_v41 }
 0x13f   : > { %883 = vtanh.f32 %v402_v39  ;;  %v325_v44 = vpop.f32.mrf.mxu0  ;;  %v365_v45 = vpop.f32.mrf.mxu1 }
 0x140   : > { %885 = vtanh.f32 %v397_v42  ;;  %v396_v46 = vmul.f32 0.5, %v325_v44  ;;  %v404_v47 = vmul.f32 0.5, %v365_v45 }
 0x141   : > { %887 = vtanh.f32 %v405_v43  ;;  %v692_v48 = vpop.f32.mrf.mxu0  ;;  %v704_v49 = vpop.f32.mrf.mxu1 }
 0x142   : > { %889 = vtanh.f32 %v396_v46  ;;  %v399_v50 = vmul.f32 0.5, %v692_v48  ;;  %v407_v51 = vmul.f32 0.5, %v704_v49 }
 0x143   : > { %891 = vtanh.f32 %v404_v47  ;;  %v335_v52 = vpop.f32.mrf.mxu0  ;;  %v375_v53 = vpop.f32.mrf.mxu1 }
 0x144   : > { %893 = vtanh.f32 %v399_v50  ;;  %v398_v54 = vmul.f32 0.5, %v335_v52  ;;  %v406_v55 = vmul.f32 0.5, %v375_v53 }
 0x145   : > { %895 = vtanh.f32 %v407_v51  ;;  %v695_v56 = vpop.f32.mrf.mxu0  ;;  %v707_v57 = vpop.f32.mrf.mxu1 }
 0x146   : > { %897 = vtanh.f32 %v398_v54  ;;  %v401_v58 = vmul.f32 0.5, %v695_v56  ;;  %v409_v59 = vmul.f32 0.5, %v707_v57 }
 0x147   : > { %899 = vtanh.f32 %v406_v55  ;;  %v345_v60 = vpop.f32.mrf.mxu0  ;;  %v385_v61 = vpop.f32.mrf.mxu1 }
 0x148   : > { %901 = vtanh.f32 %v401_v58  ;;  %v400_v62 = vmul.f32 0.5, %v345_v60  ;;  %v408_v63 = vmul.f32 0.5, %v385_v61 }
 0x149   : > { %v878_v0 = vpop.eup %877  ;;  %903 = vtanh.f32 %v409_v59 }
 0x14a   : > { %v880_v1 = vpop.eup %879  ;;  %v427_v2 = vmul.f32 0.5, %v878_v0  ;;  %905 = vtanh.f32 %v400_v62 }
 0x14b   : > { %v882_v3 = vpop.eup %881  ;;  %v435_v4 = vmul.f32 0.5, %v880_v1  ;;  %907 = vtanh.f32 %v408_v63 }
 0x14c   : > { %v884_v5 = vpop.eup %883  ;;  %v443_v6 = vadd.f32 0.5, %v427_v2  ;;  %v426_v7 = vmul.f32 0.5, %v882_v3 }
 0x14d   : > { %v886_v8 = vpop.eup %885  ;;  %v451_v9 = vadd.f32 0.5, %v435_v4  ;;  %v434_v10 = vmul.f32 0.5, %v884_v5 }
 0x14e   : > { %v888_v11 = vpop.eup %887  ;;  %459 = vst [vmem:[%s1381_s12 + $0x8] sm:$0xff] %v443_v6  ;;  %v442_v12 = vadd.f32 0.5, %v426_v7  ;;  %v429_v13 = vmul.f32 0.5, %v886_v8 }
 0x14f   : > { %v890_v14 = vpop.eup %889  ;;  %467 = vst [vmem:[%s1381_s12 + $0x48] sm:$0xff] %v451_v9  ;;  %v450_v15 = vadd.f32 0.5, %v434_v10  ;;  %v437_v16 = vmul.f32 0.5, %v888_v11 }
 0x150   : > { %v892_v17 = vpop.eup %891  ;;  %458 = vst [vmem:[%s1381_s12] sm:$0xff] %v442_v12  ;;  %v445_v18 = vadd.f32 0.5, %v429_v13  ;;  %v428_v19 = vmul.f32 0.5, %v890_v14 }
 0x151   : > { %v894_v20 = vpop.eup %893  ;;  %466 = vst [vmem:[%s1381_s12 + $0x40] sm:$0xff] %v450_v15  ;;  %v453_v21 = vadd.f32 0.5, %v437_v16  ;;  %v436_v22 = vmul.f32 0.5, %v892_v17 }
 0x152   : > { %v896_v23 = vpop.eup %895  ;;  %461 = vst [vmem:[%s1381_s12 + $0x18] sm:$0xff] %v445_v18  ;;  %v444_v24 = vadd.f32 0.5, %v428_v19  ;;  %v431_v25 = vmul.f32 0.5, %v894_v20 }
 0x153   : > { %v898_v26 = vpop.eup %897  ;;  %469 = vst [vmem:[%s1381_s12 + $0x58] sm:$0xff] %v453_v21  ;;  %v452_v27 = vadd.f32 0.5, %v436_v22  ;;  %v439_v28 = vmul.f32 0.5, %v896_v23 }
 0x154   : > { %v900_v29 = vpop.eup %899  ;;  %460 = vst [vmem:[%s1381_s12 + $0x10] sm:$0xff] %v444_v24  ;;  %v447_v30 = vadd.f32 0.5, %v431_v25  ;;  %v430_v31 = vmul.f32 0.5, %v898_v26 }
 0x155   : > { %v902_v32 = vpop.eup %901  ;;  %468 = vst [vmem:[%s1381_s12 + $0x50] sm:$0xff] %v452_v27  ;;  %v455_v33 = vadd.f32 0.5, %v439_v28  ;;  %v438_v34 = vmul.f32 0.5, %v900_v29 }
 0x156   : > { %v904_v35 = vpop.eup %903  ;;  %463 = vst [vmem:[%s1381_s12 + $0x28] sm:$0xff] %v447_v30  ;;  %v446_v36 = vadd.f32 0.5, %v430_v31  ;;  %v433_v37 = vmul.f32 0.5, %v902_v32 }
 0x157   : > { %v906_v38 = vpop.eup %905  ;;  %471 = vst [vmem:[%s1381_s12 + $0x68] sm:$0xff] %v455_v33  ;;  %v454_v39 = vadd.f32 0.5, %v438_v34  ;;  %v441_v40 = vmul.f32 0.5, %v904_v35 }
 0x158   : > { %v908_v41 = vpop.eup %907  ;;  %462 = vst [vmem:[%s1381_s12 + $0x20] sm:$0xff] %v446_v36  ;;  %v449_v42 = vadd.f32 0.5, %v433_v37  ;;  %v432_v43 = vmul.f32 0.5, %v906_v38 }
 0x159   : > { %470 = vst [vmem:[%s1381_s12 + $0x60] sm:$0xff] %v454_v39  ;;  %v457_v44 = vadd.f32 0.5, %v441_v40  ;;  %v440_v45 = vmul.f32 0.5, %v908_v41 }
 0x15a   : > { %465 = vst [vmem:[%s1381_s12 + $0x38] sm:$0xff] %v449_v42  ;;  %v448_v46 = vadd.f32 0.5, %v432_v43 }
 0x15b   : > { %473 = vst [vmem:[%s1381_s12 + $0x78] sm:$0xff] %v457_v44  ;;  %v456_v47 = vadd.f32 0.5, %v440_v45 }
 0x15c   : > { %464 = vst [vmem:[%s1381_s12 + $0x30] sm:$0xff] %v448_v46 }
 0x15d   : > { %472 = vst [vmem:[%s1381_s12 + $0x70] sm:$0xff] %v456_v47 }
 0x15e   : > { %978 = shalt.err (!%p975_p4)
}
 0x15f   : > { %s979_s28 = scalar_lea.hbm %s1401_s4, 2048  ;;  %s983_s25 = scalar_lea.hbm %s1523_s26, 8192 }
 0x160   : > { %p980_p5 = scmp.ne.s32.totalorder %s1401_s4, %s979_s28  ;;  %p984_p3 = scmp.lt.s32.totalorder %s1401_s4, %s1523_s26 }
 0x161   : > { %p985_p13 = scmp.lt.s32.totalorder %s983_s25, %s979_s28 }
 0x162   : > { %p981_p10 = pnand %p980_p5, %p1524_p7 }
 0x163   : > { %p986_p0 = por %p985_p13, %p984_p3 }
 0x164   : > { %p982_p12 = pneg %p981_p10 }
 0x166   : > { %p987_p6 = pnand %p986_p0, %p982_p12 }
 0x168   : > { %990 = shalt.err (!%p987_p6)
}
 0x169   : > { %s1121_s19 = smov 128   ;;  %s1122_s23 = smov 256  }
 0x16a   : > { %s1123_s30 = smov 8  }
 0x16b   : > { %744 = dma.vmem_to_hbm [thread:$0]  (%p1524_p7), %s1404_s6, 2048, %s1401_s4, %s1411_s21, %s1121_s19, %s1122_s23, %s1123_s30  }
 0x16c PF: > { %p758_p11 = scmp.ge.s32.totalorder %s1113_s22, 2  ;;  %s505_s3 = sand.u32 1, %s1061_s9  }
 0x16d   : > { %p1525_p8 = scmp.ne.s32.totalorder %s1517_s27, 0  ;;  %s506_s5 = scalar_lea.sflag [#allocation4], %s505_s3 }
 0x16f   : > { %p754_p9 = pnand %p758_p11, %p1525_p8 }
 0x171   : > { %p755_p1 = pneg %p754_p9 }
 0x173   : > { %1056 = dma.done.wait (%p755_p1), %s506_s5, 2048  }
 0x174   : > { %1058 = vsyncadd (%p755_p1), %s506_s5, 4294965248  ;;  %s21_s22 = sadd.s32 1, %s1113_s22   ;;  %s1527_s6 = sld [smem:[#allocation15_spill]] }
 0x175   : > { %p1439_p2 = scmp.ge.s32.totalorder %s21_s22, 6   ;;  %s1528_s19 = sld [smem:[#allocation12_spill]] }
 0x176   : > { %s1529_s27 = sld [smem:[#allocation13_spill]]  ;;  %s1532_s9 = smov %s1065_s10 }
 0x177   : > { %s1530_s21 = sld [smem:[#allocation14_spill]]  ;;  %s1533_s10 = smov %s1069_s11 }
 0x178   : > { %s1534_s11 = smov %s1305_s0  ;;  %s1535_s12 = smov %s1077_s13 }
 0x179   : > { %s1536_s13 = smov %s1081_s14  ;;  %s1538_s15 = smov %s1089_s16 }
 0x17a   : > { %s1537_s14 = smov %s1527_s6  ;;  %s1539_s16 = smov %s1093_s17 }
 0x17b   : > { %s1540_s17 = smov %s1302_s2  ;;  %s1541_s18 = smov %s1105_s20 }
 0x17c   : > { %s1542_s20 = smov %s1529_s27  ;;  %20 = sbr.rel (!%p1439_p2) target bundleno = 15 (0xf), region = 86 }
 0x181   :  { %511 = vsyncpa [#allocation3], 1 }
 0x182   :  { %513 = vsyncpa [#allocation3 + $0x1], 1 }
 0x183   :  { %514 = vsyncpa [#allocation6], 1 }
 0x184   :  { %516 = vsyncpa [#allocation6 + $0x1], 1 }
 0x185   :  { %517 = vsyncpa [#allocation4], 1 }
 0x186   :  { %519 = vsyncpa [#allocation4 + $0x1], 1 }

</bundles_post_ra>
